<compile_context>
chip_gen: v7x
topology: tpu7x:2x2x1
jax: 0.10.0
libtpu: 0.0.40
codegen_flags: <defaults>
</compile_context>

<pallas_src>
import jax
import jax.numpy as jnp
from jax.experimental import pallas as pl
from jax.experimental.pallas import tpu as pltpu


_VMEM_LIMIT = 48 * 1024 * 1024    # raised scoped-VMEM limit; still fits v7x (64 MiB)
_TILE_BUDGET = 40 * 1024 * 1024   # resident tiles: (2 in halves + 1 out) x 2 buffers
_ROW_TARGET = 512                 # target rows per tile (mem-bound sweet spot)
_COL_TARGET = 2048                # target hidden (lane) elements per tile


def _sublane_pack(dtype) -> int:
    # Rows per vreg sublane group: 8 for 4-byte, 16 for 2-byte, 32 for 1-byte dtypes.
    return max(1, 4 // jnp.dtype(dtype).itemsize) * 8


def _silu_f32(x_right):
    xr = x_right.astype(jnp.float32)
    # sigmoid = 1 / (1 + exp(-x)); exp goes to the EUP, reciprocal kept exact
    # (approx=False) so results match the jax.nn.sigmoid reference.
    sig = pl.reciprocal(1.0 + jnp.exp(-xr), approx=False)
    return xr * sig


def _gate(x_left, silu_f32, out_dtype):
    if jnp.dtype(out_dtype) == jnp.float32:
        return x_left.astype(jnp.float32) * silu_f32
    # Keep the gating multiply in the native low-precision dtype (bf16 VALU on
    # v6e/v7x halves vreg pressure; silu itself stayed f32).
    # TODO(synk): on v5e (no bf16 VALU) an all-f32 gating multiply may be preferable.
    return x_left * silu_f32.astype(out_dtype)


def _swiglu_split_kernel(xl_ref, xr_ref, o_ref):
    # xl_ref / xr_ref / o_ref: lane-aligned (tm, tn) tiles; no in-kernel lane slicing.
    o_ref[...] = _gate(xl_ref[...], _silu_f32(xr_ref[...]), o_ref.dtype).astype(o_ref.dtype)


def _swiglu_fullrow_kernel(x_ref, o_ref):
    # Fallback when hidden is not a multiple of 128: one (tm, 2D) input block.
    d = o_ref.shape[-1]
    x = x_ref[...]
    o_ref[...] = _gate(x[:, :d], _silu_f32(x[:, d:]), o_ref.dtype).astype(o_ref.dtype)


def _pick_col_tile(d: int) -> int:
    # Largest multiple-of-128 divisor of d that is <= _COL_TARGET (so the block
    # column offset of the right half, d // tn, is exact).
    if d <= _COL_TARGET:
        return d
    t = (_COL_TARGET // 128) * 128
    while t >= 128:
        if d % t == 0:
            return t
        t -= 128
    return d


def _pick_row_tile(rows: int, pack: int, bytes_per_tile_row: int) -> int:
    cap = max(pack, _TILE_BUDGET // max(bytes_per_tile_row, 1))
    tm = min(_ROW_TARGET, (cap // pack) * pack)
    tm = max(tm, pack)
    if rows <= tm:
        return rows            # full extent is always a legal block shape
    return tm                  # multiple of the sublane packing; ragged tail is handled


def swiglu(x: jax.Array) -> jax.Array:
    """SwiGLU over the last axis: split in half, out = left * silu(right)."""
    orig_shape = x.shape
    two_d = orig_shape[-1]
    assert two_d % 2 == 0, "last dim must be even"
    d = two_d // 2

    rows = 1
    for s in orig_shape[:-1]:
        rows *= s
    x2 = x.reshape(rows, two_d)

    itemsize = jnp.dtype(x.dtype).itemsize
    pack = _sublane_pack(x.dtype)

    if d % 128 == 0:
        # ---- optimized path: 2-D grid, separate lane-aligned half blocks ----
        tn = _pick_col_tile(d)
        tm = _pick_row_tile(rows, pack, 2 * 3 * tn * itemsize)
        col_off = d // tn                     # block-index offset of the right half
        grid = (pl.cdiv(rows, tm), d // tn)
        out = pl.pallas_call(
            _swiglu_split_kernel,
            out_shape=jax.ShapeDtypeStruct((rows, d), x.dtype),
            grid_spec=pltpu.PrefetchScalarGridSpec(
                num_scalar_prefetch=0,
                grid=grid,
                in_specs=[
                    pl.BlockSpec((tm, tn), lambda i, j: (i, j)),            # left half
                    pl.BlockSpec((tm, tn), lambda i, j: (i, j + col_off)),  # right half
                ],
                out_specs=pl.BlockSpec((tm, tn), lambda i, j: (i, j)),
            ),
            compiler_params=pltpu.CompilerParams(
                dimension_semantics=("parallel", "parallel"),
                vmem_limit_bytes=_VMEM_LIMIT,
            ),
        )(x2, x2)
    else:
        # ---- fallback: hidden dim not lane-aligned -> full-row blocks -------
        tm = _pick_row_tile(rows, pack, 2 * 3 * d * itemsize)
        grid = (pl.cdiv(rows, tm),)
        out = pl.pallas_call(
            _swiglu_fullrow_kernel,
            out_shape=jax.ShapeDtypeStruct((rows, d), x.dtype),
            grid_spec=pltpu.PrefetchScalarGridSpec(
                num_scalar_prefetch=0,
                grid=grid,
                in_specs=[pl.BlockSpec((tm, two_d), lambda i: (i, 0))],
                out_specs=pl.BlockSpec((tm, d), lambda i: (i, 0)),
            ),
            compiler_params=pltpu.CompilerParams(
                dimension_semantics=("parallel",),
                vmem_limit_bytes=_VMEM_LIMIT,
            ),
        )(x2)
    return out.reshape(*orig_shape[:-1], d)


if __name__ == "__main__":
    def ref_swiglu(x):
        xl, xr = jnp.split(x, 2, axis=-1)
        return xl * (xr * jax.nn.sigmoid(xr))

    key = jax.random.PRNGKey(0)

    # Case 1: original small shape (hidden=32 < 128) exercises the fallback path.
    batch, seq, hidden = 2, 8, 32
    x_small = jax.random.normal(key, (batch, seq, 2 * hidden), dtype=jnp.float32)
    out_small = jax.block_until_ready(swiglu(x_small))
    assert out_small.shape == (batch, seq, hidden)
    assert jnp.allclose(out_small, ref_swiglu(x_small), atol=1e-5, rtol=1e-5)

    # Case 2: lane-aligned hidden (128) exercises the optimized split-spec path.
    batch, seq, hidden = 2, 8, 128
    x_big = jax.random.normal(jax.random.PRNGKey(0), (batch, seq, 2 * hidden),
                              dtype=jnp.float32)
    out_big = jax.block_until_ready(swiglu(x_big))
    assert out_big.shape == (batch, seq, hidden)
    assert jnp.allclose(out_big, ref_swiglu(x_big), atol=1e-5, rtol=1e-5)

    print("KERNEL_OK")
</pallas_src>

<mosaic_0001>
module attributes {stable_mosaic.version = 11 : i64} {
  func.func @_swiglu_fullrow_kernel(%arg0: i32, %arg1: memref<16x64xf32, #tpu.memory_space<vmem>>, %arg2: memref<16x32xf32, #tpu.memory_space<vmem>>) attributes {dimension_semantics = [#tpu.dimension_semantics<parallel>], iteration_bounds = array<i64: 1>, scalar_prefetch = 0 : i64, scratch_operands = 0 : i64, tpu.core_type = #tpu.core_type<tc>, window_params = [{transform_indices = @transform_0, window_bounds = array<i64: 16, 64>}, {transform_indices = @transform_1, window_bounds = array<i64: 16, 32>}]} {
    %c0 = arith.constant 0 : index
    %c0_0 = arith.constant 0 : index
    %0 = vector.load %arg1[%c0, %c0_0] : memref<16x64xf32, #tpu.memory_space<vmem>>, vector<16x64xf32>
    %1 = vector.extract_strided_slice %0 {offsets = [0, 0], sizes = [16, 32], strides = [1, 1]} : vector<16x64xf32> to vector<16x32xf32>
    %2 = vector.extract_strided_slice %0 {offsets = [0, 32], sizes = [16, 32], strides = [1, 1]} : vector<16x64xf32> to vector<16x32xf32>
    %cst = arith.constant 0.000000e+00 : f32
    %3 = vector.broadcast %cst : f32 to vector<16x32xf32>
    %4 = arith.subf %3, %2 : vector<16x32xf32>
    %5 = math.exp %4 : vector<16x32xf32>
    %cst_1 = arith.constant 1.000000e+00 : f32
    %6 = vector.broadcast %cst_1 : f32 to vector<16x32xf32>
    %7 = arith.addf %6, %5 : vector<16x32xf32>
    %8 = tpu.reciprocal %7 : vector<16x32xf32> -> vector<16x32xf32>
    %9 = arith.mulf %2, %8 : vector<16x32xf32>
    %10 = arith.mulf %1, %9 : vector<16x32xf32>
    %c0_2 = arith.constant 0 : index
    %c0_3 = arith.constant 0 : index
    %11 = vector.load %arg2[%c0_2, %c0_3] : memref<16x32xf32, #tpu.memory_space<vmem>>, vector<16x32xf32>
    tpu.vector_store %arg2[%c0_2, %c0_3], %10 {strides = array<i32>} : memref<16x32xf32, #tpu.memory_space<vmem>>, vector<16x32xf32>,
    return
  }
  func.func @transform_0(%arg0: i32) -> (i32, i32) {
    %c0_i32 = arith.constant 0 : i32
    %c0_i32_0 = arith.constant 0 : i32
    return %arg0, %c0_i32 : i32, i32
  }
  func.func @transform_1(%arg0: i32) -> (i32, i32) {
    %c0_i32 = arith.constant 0 : i32
    %c0_i32_0 = arith.constant 0 : i32
    return %arg0, %c0_i32 : i32, i32
  }
}

</mosaic_0001>

<bundles_post_ra>
// kernel: tpu_custom_call.1
= control target key start
LH: loop header
LB: loop body
LE: loop exit
PB: predicated region body
PF: predicated region fallthrough
CT: control target
= control target key end

     0   :  { %6 = vsyncpa [#allocation3], 0  ;;  %s173_s0 = inlined_call_operand.hbm [shape: f32[16,64], index: 0, kind: input, shape index: {}]   ;;  %s174_s1 = inlined_call_operand.hbm [shape: f32[16,32], index: 1, kind: output, shape index: {}]  }
   0x1   :  { %7 = vsyncpa [#allocation4], 0  ;;  %s128_s6 = smov [#allocation2]   ;;  %s80_s10 = scalar_lea.hbm %s173_s0, 256 }
   0x2   :  { %s13_s7 = sshll.u32 %s128_s6, 4  ;;  %p81_p0 = scmp.ne.s32.totalorder %s173_s0, %s80_s10  ;;  %s14_s7 = int_to_ptr.vmem [resolvable:$true] %s13_s7 }
   0x3   :  { %p84_p1 = scmp.lt.u32.totalorder %s80_s10, %s173_s0 }
   0x5   :  { %p86_p2 = pnand %p84_p1, %p81_p0 }
   0x7   :  { %89 = shalt.err (!%p86_p2)
}
   0x8   :  { %s90_s15 = scalar_lea.vmem %s14_s7, 256  ;;  %p95_p4 = scmp.lt.s32.totalorder %s14_s7, %s14_s7 }
   0x9   :  { %p91_p3 = scmp.ne.s32.totalorder %s14_s7, %s90_s15  ;;  %p96_p5 = scmp.lt.s32.totalorder %s90_s15, %s90_s15 }
   0xb   :  { %p97_p6 = por %p96_p5, %p95_p4 }
   0xd   :  { %p98_p7 = pnand %p97_p6, %p91_p3 }
   0xf   :  { %101 = shalt.err (!%p98_p7)
}
  0x10   :  { %s129_s16 = smov 128   ;;  %s130_s17 = smov 8  }
  0x11   :  { %19 = dma.hbm_to_vmem [thread:$0]  %s173_s0, 256, %s14_s7, [#allocation3], %s129_s16, %s129_s16, %s130_s17  }
  0x12   :  { %124 = dma.done.wait [#allocation3], 256  }
  0x13   :  { %125 = vsyncadd [#allocation3], 4294967040  ;;  %v23_v0 = vld [vmem:[#allocation2] sm:$0xff]  ;;  %v24_v1 = vld [vmem:[#allocation2 + $0x8] sm:$0xff]  ;;  %s131_s0 = smov 96   ;;  %vm47_vm0 = vcmask 261120  }
  0x14   :  { %v25_v2 = vsub.f32 0.0, %v23_v0  ;;  %v26_v3 = vsub.f32 0.0, %v24_v1  ;;  %s132_s20 = smov [#allocation5]  }
  0x15   :  { %s55_s21 = sshll.u32 %s132_s20, 4  ;;  %s56_s21 = int_to_ptr.vmem [resolvable:$true] %s55_s21 }
  0x16   :  { %v27_v4 = vmul.f32 1.442695, %v25_v2  ;;  %v29_v5 = vmul.f32 1.442695, %v26_v3  ;;  %s102_s22 = scalar_lea.vmem %s56_s21, 256  ;;  %p107_p9 = scmp.lt.s32.totalorder %s56_s21, %s56_s21 }
  0x17   :  { %p103_p8 = scmp.ne.s32.totalorder %s56_s21, %s102_s22  ;;  %p108_p10 = scmp.lt.s32.totalorder %s102_s22, %s102_s22 }
  0x18   :  { %72 = vpow2.f32 %v27_v4 }
  0x19   :  { %74 = vpow2.f32 %v29_v5  ;;  %p109_p11 = por %p108_p10, %p107_p9 }
  0x1b   :  { %p110_p12 = pnand %p109_p11, %p103_p8 }
  0x22   :  { %v73_v6 = vpop.eup %72 }
  0x23   :  { %v75_v7 = vpop.eup %74  ;;  %v31_v8 = vadd.f32 1.0, %v73_v6 }
  0x24   :  { %v32_v9 = vadd.f32 1.0, %v75_v7 }
  0x25   :  { %76 = vrcp.f32 %v31_v8 }
  0x26   :  { %78 = vrcp.f32 %v32_v9 }
  0x2f   :  { %v77_v10 = vpop.eup %76 }
  0x30   :  { %v79_v11 = vpop.eup %78  ;;  %v35_v12 = vmul.f32 %v77_v10, %v23_v0 }
  0x31   :  { %v36_v13 = vmul.f32 %v79_v11, %v24_v1 }
  0x32   :  { %39 = vrot.lane.b32.xlu0 %v35_v12, %s131_s0 }
  0x36   :  { %41 = vrot.lane.b32.xlu0 %v36_v13, %s131_s0 }
  0xa4   :  { %v40_v14 = vpop.permute.xlu0 %39 }
  0xa5   :  { %v45_v15 = vmul.f32 %v40_v14, %v23_v0 }
  0xa7   :  { %48 = vst.msk [vmem:[#allocation5] sm:$0xff] %vm47_vm0, %v45_v15 }
  0xa8   :  { %v42_v16 = vpop.permute.xlu0 %41 }
  0xa9   :  { %v46_v17 = vmul.f32 %v42_v16, %v24_v1 }
  0xab   :  { %49 = vst.msk [vmem:[#allocation5 + $0x8] sm:$0xff] %vm47_vm0, %v46_v17 }
  0xac   :  { %113 = shalt.err (!%p110_p12)
}
  0xad   :  { %s114_s25 = scalar_lea.hbm %s174_s1, 256 }
  0xae   :  { %p115_p13 = scmp.ne.s32.totalorder %s174_s1, %s114_s25  ;;  %p118_p0 = scmp.lt.u32.totalorder %s114_s25, %s174_s1 }
  0xb0   :  { %p120_p1 = pnand %p118_p0, %p115_p13 }
  0xb2   :  { %123 = shalt.err (!%p120_p1)
}
  0xb3   :  { %61 = dma.vmem_to_hbm [thread:$0]  %s56_s21, 256, %s174_s1, [#allocation4], %s129_s16, %s129_s16, %s130_s17  }
  0xb4   :  { %126 = dma.done.wait [#allocation4], 256  }
  0xb5   :  { %127 = vsyncadd [#allocation4], 4294967040 }
  0xb6   :  { %65 = vsyncpa [#allocation3], 1 }
  0xb7   :  { %66 = vsyncpa [#allocation4], 1 }

</bundles_post_ra>
